<compile_context>
chip_gen: v6e
topology: v6e:2x2x1
jax: 0.10.0
libtpu: 0.0.40
codegen_flags: <defaults>
</compile_context>

<pallas_src>
import functools

import jax
import jax.numpy as jnp
from jax import lax
from jax.experimental import pallas as pl
from jax.experimental.pallas import tpu as pltpu


def _round_up(v, m):
    return ((v + m - 1) // m) * m


# --------------------------------------------------------------------------
# in-kernel helpers (transposed layout: activations are (features, TILE_B))
# --------------------------------------------------------------------------
def _mlp_logits_t(x_ref, param_refs, num_layers):
    """tanh MLP on (features, TILE_B) tiles; bf16 matmul inputs, f32 math."""
    h = x_ref[...]                                      # bf16 (F, TILE_B)
    for li in range(num_layers):
        w_t = param_refs[2 * li][...]                   # bf16 (fan_out, fan_in)
        b = param_refs[2 * li + 1][...]                 # f32  (fan_out, 1)
        z = jnp.dot(w_t, h, preferred_element_type=jnp.float32) + b
        if li == num_layers - 1:
            return z                                    # f32 (A, TILE_B) logits
        h = jnp.tanh(z).astype(jnp.bfloat16)            # tanh in f32; bf16 for MXU only
    return None  # unreachable


def _log_softmax_entropy_t(logits):
    """Fused log-softmax + entropy over the sublane (action) axis.

    logits: (A, TILE_B) f32 -> log_p (A, TILE_B), ent (1, TILE_B).
    Single exp pass; reductions over A are sublane reductions.
    """
    m = jnp.max(logits, axis=0, keepdims=True)
    z = logits - m
    e = jnp.exp(z)                                      # the only exp over (A, TILE_B)
    s = jnp.sum(e, axis=0, keepdims=True)
    log_s = jnp.log(s)
    log_p = z - log_s
    ent = log_s - jnp.sum(e * z, axis=0, keepdims=True) / s
    return log_p, ent


# --------------------------------------------------------------------------
# kernels (two trace-time variants)
# --------------------------------------------------------------------------
def _policy_logp_kernel(num_layers, a_ref, x_ref, *refs):
    """Given-action path (PPO update hot path): no sampling work at all."""
    param_refs = refs[: 2 * num_layers]
    out_ref = refs[2 * num_layers]                      # (2, TILE_B) f32

    logits = _mlp_logits_t(x_ref, param_refs, num_layers)   # (A, TILE_B)
    log_p, ent = _log_softmax_entropy_t(logits)

    A, tb = logits.shape
    idx = lax.broadcasted_iota(jnp.int32, (A, tb), 0)
    onehot = idx == a_ref[...]                          # (A, TILE_B) vs (1, TILE_B)
    logp_a = jnp.sum(jnp.where(onehot, log_p, 0.0), axis=0, keepdims=True)

    out_ref[0:1, :] = logp_a                            # lane-dense full-row stores
    out_ref[1:2, :] = ent


def _policy_sample_kernel(num_layers, x_ref, g_ref, *refs):
    """Rollout path: Gumbel-max sampling with host-generated Gumbel noise."""
    param_refs = refs[: 2 * num_layers]
    a_out_ref, out_ref = refs[2 * num_layers :]         # (1, TILE_B) i32, (2, TILE_B) f32

    logits = _mlp_logits_t(x_ref, param_refs, num_layers)   # (A, TILE_B)
    log_p, ent = _log_softmax_entropy_t(logits)

    A, tb = logits.shape
    idx = lax.broadcasted_iota(jnp.int32, (A, tb), 0)

    scores = logits + g_ref[...]
    smax = jnp.max(scores, axis=0, keepdims=True)
    sampled = jnp.min(
        jnp.where(scores >= smax, idx, jnp.int32(A)), axis=0, keepdims=True
    )                                                    # (1, TILE_B) int32

    onehot = idx == sampled
    logp_a = jnp.sum(jnp.where(onehot, log_p, 0.0), axis=0, keepdims=True)

    a_out_ref[...] = sampled
    out_ref[0:1, :] = logp_a
    out_ref[1:2, :] = ent


# --------------------------------------------------------------------------
# wrapper
# --------------------------------------------------------------------------
def _param_blocks(params):
    """Flatten (W, b) -> W.T bf16 (fan_out, fan_in), b (fan_out, 1) f32.

    Blocks are the full arrays with a constant index_map, so they stay
    resident in VMEM across all batch tiles.
    """
    # NOTE: pipeline_mode=pl.Buffered(1) would drop the second buffer for
    # these resident blocks; skipped here (trivial VMEM) for compile robustness.
    flat, specs = [], []
    for w, b in params:
        w_t = jnp.transpose(w).astype(jnp.bfloat16)     # (fan_out, fan_in)
        b_c = b.reshape(-1, 1).astype(jnp.float32)      # (fan_out, 1)
        flat.append(w_t)
        flat.append(b_c)
        specs.append(pl.BlockSpec(tuple(w_t.shape), lambda i: (0, 0)))
        specs.append(pl.BlockSpec(tuple(b_c.shape), lambda i: (0, 0)))
    return flat, specs


def _vmem_limit_bytes(tile_b, in_features, A, params):
    """Tight VMEM budget: double-buffered tiles + resident params + headroom."""
    est = 2 * in_features * tile_b * 2                  # x tile (bf16), 2 buffers
    est += 2 * max(A, 1) * tile_b * 4                   # aux input tile (a / gumbel)
    for w, b in params:
        est += 2 * (w.size * 2 + b.size * 4)            # params (2 buffers worst case)
    est += 2 * (2 * tile_b * 4 + tile_b * 4)            # packed f32 + int32 outputs
    widest = max([in_features] + [int(w.shape[1]) for w, _ in params])
    est += 6 * widest * tile_b * 4                      # live f32 intermediates
    # Floor for safety, cap at 32 MiB (leave headroom on v7x's 64 MiB VMEM).
    return int(min(max(2 * est, 16 * 2**20), 32 * 2**20))


def categorical_policy_forward(params, x, a=None, seed=0):
    """params: list of (W, b) with W (fan_in, fan_out), b (fan_out,). x: (B, F)."""
    B, in_features = x.shape
    A = params[-1][0].shape[1]
    num_layers = len(params)

    # Batch tile maps to the lane axis -> must be a multiple of 128.
    # Aim for >= 2 grid steps when the batch allows it (v7x dual-TC sharding),
    # but keep tiles large (<= 2048) to amortize the ~0.35 us per-step overhead.
    tile_b = min(2048, max(128, _round_up((B + 1) // 2, 128)))
    b_pad = _round_up(B, tile_b)
    grid = (b_pad // tile_b,)

    # Transposed input layout: (F, b_pad) bf16, batch on lanes.
    x_t = jnp.pad(x.astype(jnp.bfloat16).T, ((0, 0), (0, b_pad - B)))
    flat_params, param_specs = _param_blocks(params)

    x_spec = pl.BlockSpec((in_features, tile_b), lambda i: (0, i))
    out_f_spec = pl.BlockSpec((2, tile_b), lambda i: (0, i))

    compiler_params = pltpu.CompilerParams(
        dimension_semantics=("parallel",),              # shard batch tiles across TCs
        vmem_limit_bytes=_vmem_limit_bytes(tile_b, in_features, A, params),
    )

    if a is not None:
        # ---------------- given-action path (hot PPO-update path) ----------------
        a_in = jnp.pad(a.astype(jnp.int32).reshape(1, B), ((0, 0), (0, b_pad - B)))
        a_spec = pl.BlockSpec((1, tile_b), lambda i: (0, i))
        packed = pl.pallas_call(
            functools.partial(_policy_logp_kernel, num_layers),
            grid=grid,
            in_specs=[a_spec, x_spec] + param_specs,
            out_specs=out_f_spec,
            out_shape=jax.ShapeDtypeStruct((2, b_pad), jnp.float32),
            compiler_params=compiler_params,
        )(a_in, x_t, *flat_params)
        a_out = a.astype(jnp.int32)
    else:
        # ---------------- sampling path (rollout) ----------------
        # TODO(synk): generate Gumbel noise in-kernel via pltpu.prng_seed +
        # pltpu.prng_random_bits on real HW; host-side jax.random is kept here
        # for portability (tiny (A, b_pad) stream, negligible DMA).
        g = jax.random.gumbel(jax.random.PRNGKey(seed), (A, b_pad), jnp.float32)
        g_spec = pl.BlockSpec((A, tile_b), lambda i: (0, i))
        a_out_spec = pl.BlockSpec((1, tile_b), lambda i: (0, i))
        a_pad, packed = pl.pallas_call(
            functools.partial(_policy_sample_kernel, num_layers),
            grid=grid,
            in_specs=[x_spec, g_spec] + param_specs,
            out_specs=(a_out_spec, out_f_spec),
            out_shape=(
                jax.ShapeDtypeStruct((1, b_pad), jnp.int32),
                jax.ShapeDtypeStruct((2, b_pad), jnp.float32),
            ),
            compiler_params=compiler_params,
        )(x_t, g, *flat_params)
        a_out = a_pad[0, :B]

    logp = packed[0, :B]
    ent = packed[1, :B]
    # torch .squeeze() semantics
    return jnp.squeeze(a_out), jnp.squeeze(logp), jnp.squeeze(ent)


def init_params(key, layer_sizes):
    """W ~ U(-1/sqrt(fan_in), 1/sqrt(fan_in)) (nn.Linear default), b = 0."""
    params = []
    for fan_in, fan_out in zip(layer_sizes[:-1], layer_sizes[1:]):
        key, sub = jax.random.split(key)
        bound = 1.0 / jnp.sqrt(fan_in)
        w = jax.random.uniform(
            sub, (fan_in, fan_out), jnp.float32, minval=-bound, maxval=bound
        )
        b = jnp.zeros((fan_out,), jnp.float32)
        params.append((w, b))
    return params


if __name__ == "__main__":
    key = jax.random.PRNGKey(0)

    B = 8
    in_features = 16
    hidden_sizes = (32, 32)
    action_dim = 6

    k_x, k_p, k_a = jax.random.split(key, 3)
    x = jax.random.normal(k_x, (B, in_features), jnp.float32)
    params = init_params(k_p, [in_features] + list(hidden_sizes) + [action_dim])

    # a=None path: Gumbel-max sampling inside the kernel
    a_s, logp_s, ent_s = categorical_policy_forward(params, x, a=None, seed=1234)
    jax.block_until_ready((a_s, logp_s, ent_s))

    # given-a path: log-prob / entropy of supplied actions (hot PPO path)
    a_given = jax.random.randint(k_a, (B,), 0, action_dim, jnp.int32)
    a_g, logp_g, ent_g = categorical_policy_forward(params, x, a=a_given)
    jax.block_until_ready((a_g, logp_g, ent_g))

    # plain-JAX reference (same bf16 matmul-input casting as the kernel)
    def ref_logits(xv):
        h = xv.astype(jnp.bfloat16)
        for w, b in params[:-1]:
            z = jnp.dot(h, w.astype(jnp.bfloat16),
                        preferred_element_type=jnp.float32) + b
            h = jnp.tanh(z).astype(jnp.bfloat16)
        w, b = params[-1]
        return jnp.dot(h, w.astype(jnp.bfloat16),
                       preferred_element_type=jnp.float32) + b

    lg = ref_logits(x)
    log_p_ref = lg - jax.scipy.special.logsumexp(lg, axis=-1, keepdims=True)
    ent_ref = -jnp.sum(jnp.exp(log_p_ref) * log_p_ref, axis=-1)
    logp_ref_given = jnp.take_along_axis(log_p_ref, a_given[:, None], axis=-1)[:, 0]

    assert jnp.allclose(ent_g, ent_ref, atol=1e-4)
    assert jnp.allclose(logp_g, logp_ref_given, atol=1e-4)
    assert jnp.all(a_g == a_given)
    assert jnp.all((a_s >= 0) & (a_s < action_dim))
    logp_ref_sampled = jnp.take_along_axis(log_p_ref, a_s[:, None], axis=-1)[:, 0]
    assert jnp.allclose(logp_s, logp_ref_sampled, atol=1e-4)
    assert jnp.allclose(ent_s, ent_ref, atol=1e-4)

    print("KERNEL_OK")
</pallas_src>

<mosaic_0001>
module attributes {stable_mosaic.version = 11 : i64} {
  func.func @_policy_sample_kernel(%arg0: i32, %arg1: memref<16x128xbf16, #tpu.memory_space<vmem>>, %arg2: memref<6x128xf32, #tpu.memory_space<vmem>>, %arg3: memref<32x16xbf16, #tpu.memory_space<vmem>>, %arg4: memref<32x1xf32, #tpu.memory_space<vmem>>, %arg5: memref<32x32xbf16, #tpu.memory_space<vmem>>, %arg6: memref<32x1xf32, #tpu.memory_space<vmem>>, %arg7: memref<6x32xbf16, #tpu.memory_space<vmem>>, %arg8: memref<6x1xf32, #tpu.memory_space<vmem>>, %arg9: memref<1x128xi32, #tpu.memory_space<vmem>>, %arg10: memref<2x128xf32, #tpu.memory_space<vmem>>) attributes {dimension_semantics = [#tpu.dimension_semantics<parallel>], iteration_bounds = array<i64: 1>, scalar_prefetch = 0 : i64, scratch_operands = 0 : i64, tpu.core_type = #tpu.core_type<tc>, window_params = [{transform_indices = @transform_0, window_bounds = array<i64: 16, 128>}, {transform_indices = @transform_1, window_bounds = array<i64: 6, 128>}, {pipeline_mode = #tpu.pipeline_mode<synchronous>, transform_indices = @transform_2, window_bounds = array<i64: 32, 16>}, {pipeline_mode = #tpu.pipeline_mode<synchronous>, transform_indices = @transform_3, window_bounds = array<i64: 32, 1>}, {pipeline_mode = #tpu.pipeline_mode<synchronous>, transform_indices = @transform_4, window_bounds = array<i64: 32, 32>}, {pipeline_mode = #tpu.pipeline_mode<synchronous>, transform_indices = @transform_5, window_bounds = array<i64: 32, 1>}, {pipeline_mode = #tpu.pipeline_mode<synchronous>, transform_indices = @transform_6, window_bounds = array<i64: 6, 32>}, {pipeline_mode = #tpu.pipeline_mode<synchronous>, transform_indices = @transform_7, window_bounds = array<i64: 6, 1>}, {transform_indices = @transform_8, window_bounds = array<i64: 1, 128>}, {transform_indices = @transform_9, window_bounds = array<i64: 2, 128>}]} {
    %c0 = arith.constant 0 : index
    %c0_0 = arith.constant 0 : index
    %0 = vector.load %arg1[%c0, %c0_0] : memref<16x128xbf16, #tpu.memory_space<vmem>>, vector<16x128xbf16>
    %c0_1 = arith.constant 0 : index
    %c0_2 = arith.constant 0 : index
    %1 = vector.load %arg3[%c0_1, %c0_2] : memref<32x16xbf16, #tpu.memory_space<vmem>>, vector<32x16xbf16>
    %c0_3 = arith.constant 0 : index
    %c0_4 = arith.constant 0 : index
    %2 = vector.load %arg4[%c0_3, %c0_4] : memref<32x1xf32, #tpu.memory_space<vmem>>, vector<32x1xf32>
    %cst = arith.constant dense<0.000000e+00> : vector<32x128xf32>
    %3 = tpu.matmul %1, %0, %cst {dimension_numbers = #tpu.dot_dimension_numbers<[1], [0], [0], [1], [0, 0, 1, 1], [], []>} : vector<32x16xbf16>, vector<16x128xbf16>, vector<32x128xf32> -> vector<32x128xf32>
    %4 = vector.broadcast %2 : vector<32x1xf32> to vector<32x128xf32>
    %5 = arith.addf %3, %4 : vector<32x128xf32>
    %6 = math.tanh %5 : vector<32x128xf32>
    %7 = arith.truncf %6 : vector<32x128xf32> to vector<32x128xbf16>
    %c0_5 = arith.constant 0 : index
    %c0_6 = arith.constant 0 : index
    %8 = vector.load %arg5[%c0_5, %c0_6] : memref<32x32xbf16, #tpu.memory_space<vmem>>, vector<32x32xbf16>
    %c0_7 = arith.constant 0 : index
    %c0_8 = arith.constant 0 : index
    %9 = vector.load %arg6[%c0_7, %c0_8] : memref<32x1xf32, #tpu.memory_space<vmem>>, vector<32x1xf32>
    %cst_9 = arith.constant dense<0.000000e+00> : vector<32x128xf32>
    %10 = tpu.matmul %8, %7, %cst_9 {dimension_numbers = #tpu.dot_dimension_numbers<[1], [0], [0], [1], [0, 0, 1, 1], [], []>} : vector<32x32xbf16>, vector<32x128xbf16>, vector<32x128xf32> -> vector<32x128xf32>
    %11 = vector.broadcast %9 : vector<32x1xf32> to vector<32x128xf32>
    %12 = arith.addf %10, %11 : vector<32x128xf32>
    %13 = math.tanh %12 : vector<32x128xf32>
    %14 = arith.truncf %13 : vector<32x128xf32> to vector<32x128xbf16>
    %c0_10 = arith.constant 0 : index
    %c0_11 = arith.constant 0 : index
    %15 = vector.load %arg7[%c0_10, %c0_11] : memref<6x32xbf16, #tpu.memory_space<vmem>>, vector<6x32xbf16>
    %c0_12 = arith.constant 0 : index
    %c0_13 = arith.constant 0 : index
    %16 = vector.load %arg8[%c0_12, %c0_13] : memref<6x1xf32, #tpu.memory_space<vmem>>, vector<6x1xf32>
    %cst_14 = arith.constant dense<0.000000e+00> : vector<6x128xf32>
    %17 = tpu.matmul %15, %14, %cst_14 {dimension_numbers = #tpu.dot_dimension_numbers<[1], [0], [0], [1], [0, 0, 1, 1], [], []>} : vector<6x32xbf16>, vector<32x128xbf16>, vector<6x128xf32> -> vector<6x128xf32>
    %18 = vector.broadcast %16 : vector<6x1xf32> to vector<6x128xf32>
    %19 = arith.addf %17, %18 : vector<6x128xf32>
    %cst_15 = arith.constant dense<0xFF800000> : vector<128xf32>
    %20 = vector.multi_reduction <maximumf>, %19, %cst_15 [0] : vector<6x128xf32> to vector<128xf32>
    %21 = vector.shape_cast %20 : vector<128xf32> to vector<1x128xf32>
    %22 = vector.broadcast %21 : vector<1x128xf32> to vector<6x128xf32>
    %23 = arith.subf %19, %22 : vector<6x128xf32>
    %24 = math.exp %23 : vector<6x128xf32>
    %cst_16 = arith.constant dense<0.000000e+00> : vector<128xf32>
    %25 = vector.multi_reduction <add>, %24, %cst_16 [0] : vector<6x128xf32> to vector<128xf32>
    %26 = vector.shape_cast %25 : vector<128xf32> to vector<1x128xf32>
    %27 = math.log %26 : vector<1x128xf32>
    %28 = vector.broadcast %27 : vector<1x128xf32> to vector<6x128xf32>
    %29 = arith.subf %23, %28 : vector<6x128xf32>
    %30 = arith.mulf %24, %23 : vector<6x128xf32>
    %cst_17 = arith.constant dense<0.000000e+00> : vector<128xf32>
    %31 = vector.multi_reduction <add>, %30, %cst_17 [0] : vector<6x128xf32> to vector<128xf32>
    %32 = vector.shape_cast %31 : vector<128xf32> to vector<1x128xf32>
    %33 = arith.divf %32, %26 : vector<1x128xf32>
    %34 = arith.subf %27, %33 : vector<1x128xf32>
    %35 = tpu.iota {dimensions = array<i32: 0>} : vector<6x128xi32>
    %c0_18 = arith.constant 0 : index
    %c0_19 = arith.constant 0 : index
    %36 = vector.load %arg2[%c0_18, %c0_19] : memref<6x128xf32, #tpu.memory_space<vmem>>, vector<6x128xf32>
    %37 = arith.addf %19, %36 : vector<6x128xf32>
    %cst_20 = arith.constant dense<0xFF800000> : vector<128xf32>
    %38 = vector.multi_reduction <maximumf>, %37, %cst_20 [0] : vector<6x128xf32> to vector<128xf32>
    %39 = vector.shape_cast %38 : vector<128xf32> to vector<1x128xf32>
    %40 = vector.broadcast %39 : vector<1x128xf32> to vector<6x128xf32>
    %41 = arith.cmpf oge, %37, %40 : vector<6x128xf32>
    %c6_i32 = arith.constant 6 : i32
    %42 = vector.broadcast %c6_i32 : i32 to vector<6x128xi32>
    %43 = arith.select %41, %35, %42 : vector<6x128xi1>, vector<6x128xi32>
    %cst_21 = arith.constant dense<2147483647> : vector<128xi32>
    %44 = vector.multi_reduction <minsi>, %43, %cst_21 [0] : vector<6x128xi32> to vector<128xi32>
    %45 = vector.shape_cast %44 : vector<128xi32> to vector<1x128xi32>
    %46 = vector.broadcast %45 : vector<1x128xi32> to vector<6x128xi32>
    %47 = arith.cmpi eq, %35, %46 : vector<6x128xi32>
    %cst_22 = arith.constant 0.000000e+00 : f32
    %48 = vector.broadcast %cst_22 : f32 to vector<6x128xf32>
    %49 = arith.select %47, %29, %48 : vector<6x128xi1>, vector<6x128xf32>
    %cst_23 = arith.constant dense<0.000000e+00> : vector<128xf32>
    %50 = vector.multi_reduction <add>, %49, %cst_23 [0] : vector<6x128xf32> to vector<128xf32>
    %51 = vector.shape_cast %50 : vector<128xf32> to vector<1x128xf32>
    %c0_24 = arith.constant 0 : index
    %c0_25 = arith.constant 0 : index
    %52 = vector.load %arg9[%c0_24, %c0_25] : memref<1x128xi32, #tpu.memory_space<vmem>>, vector<1x128xi32>
    tpu.vector_store %arg9[%c0_24, %c0_25], %45 {strides = array<i32>} : memref<1x128xi32, #tpu.memory_space<vmem>>, vector<1x128xi32>,
    %c0_26 = arith.constant 0 : index
    %c0_27 = arith.constant 0 : index
    %53 = vector.load %arg10[%c0_26, %c0_27] : memref<2x128xf32, #tpu.memory_space<vmem>>, vector<1x128xf32>
    tpu.vector_store %arg10[%c0_26, %c0_27], %51 {strides = array<i32>} : memref<2x128xf32, #tpu.memory_space<vmem>>, vector<1x128xf32>,
    %c1 = arith.constant 1 : index
    %c0_28 = arith.constant 0 : index
    %54 = vector.load %arg10[%c1, %c0_28] : memref<2x128xf32, #tpu.memory_space<vmem>>, vector<1x128xf32>
    tpu.vector_store %arg10[%c1, %c0_28], %34 {strides = array<i32>} : memref<2x128xf32, #tpu.memory_space<vmem>>, vector<1x128xf32>,
    return
  }
  func.func @transform_0(%arg0: i32) -> (i32, i32) {
    %c0_i32 = arith.constant 0 : i32
    %c0_i32_0 = arith.constant 0 : i32
    return %c0_i32, %arg0 : i32, i32
  }
  func.func @transform_1(%arg0: i32) -> (i32, i32) {
    %c0_i32 = arith.constant 0 : i32
    %c0_i32_0 = arith.constant 0 : i32
    return %c0_i32, %arg0 : i32, i32
  }
  func.func @transform_2(%arg0: i32) -> (i32, i32) {
    %c0_i32 = arith.constant 0 : i32
    %c0_i32_0 = arith.constant 0 : i32
    %c0_i32_1 = arith.constant 0 : i32
    return %c0_i32, %c0_i32_0 : i32, i32
  }
  func.func @transform_3(%arg0: i32) -> (i32, i32) {
    %c0_i32 = arith.constant 0 : i32
    %c0_i32_0 = arith.constant 0 : i32
    %c0_i32_1 = arith.constant 0 : i32
    return %c0_i32, %c0_i32_0 : i32, i32
  }
  func.func @transform_4(%arg0: i32) -> (i32, i32) {
    %c0_i32 = arith.constant 0 : i32
    %c0_i32_0 = arith.constant 0 : i32
    %c0_i32_1 = arith.constant 0 : i32
    return %c0_i32, %c0_i32_0 : i32, i32
  }
  func.func @transform_5(%arg0: i32) -> (i32, i32) {
    %c0_i32 = arith.constant 0 : i32
    %c0_i32_0 = arith.constant 0 : i32
    %c0_i32_1 = arith.constant 0 : i32
    return %c0_i32, %c0_i32_0 : i32, i32
  }
  func.func @transform_6(%arg0: i32) -> (i32, i32) {
    %c0_i32 = arith.constant 0 : i32
    %c0_i32_0 = arith.constant 0 : i32
    %c0_i32_1 = arith.constant 0 : i32
    return %c0_i32, %c0_i32_0 : i32, i32
  }
  func.func @transform_7(%arg0: i32) -> (i32, i32) {
    %c0_i32 = arith.constant 0 : i32
    %c0_i32_0 = arith.constant 0 : i32
    %c0_i32_1 = arith.constant 0 : i32
    return %c0_i32, %c0_i32_0 : i32, i32
  }
  func.func @transform_8(%arg0: i32) -> (i32, i32) {
    %c0_i32 = arith.constant 0 : i32
    %c0_i32_0 = arith.constant 0 : i32
    return %c0_i32, %arg0 : i32, i32
  }
  func.func @transform_9(%arg0: i32) -> (i32, i32) {
    %c0_i32 = arith.constant 0 : i32
    %c0_i32_0 = arith.constant 0 : i32
    return %c0_i32, %arg0 : i32, i32
  }
}

</mosaic_0001>

<bundles_post_ra>
// kernel: tpu_custom_call.1
= control target key start
LH: loop header
LB: loop body
LE: loop exit
PB: predicated region body
PF: predicated region fallthrough
CT: control target
= control target key end

     0   :  { %15 = vsyncpa [#allocation3], 0  ;;  %vm80_vm0 = vcmask 130048   ;;  %v507_v3 = vmov 0   ;;  %s625_s0 = inlined_call_operand.vmem [shape: bf16[16,128], index: 0, kind: input, shape index: {}]   ;;  %s626_s1 = inlined_call_operand.vmem [shape: f32[6,128], index: 1, kind: input, shape index: {}]   ;;  %s627_s2 = inlined_call_operand.vmem [shape: bf16[32,16], index: 2, kind: input, shape index: {}]   ;;  %s628_s3 = inlined_call_operand.vmem [shape: f32[32,1], index: 3, kind: input, shape index: {}]   ;;  %s629_s4 = inlined_call_operand.vmem [shape: bf16[32,32], index: 4, kind: input, shape index: {}]   ;;  %s630_s5 = inlined_call_operand.vmem [shape: f32[32,1], index: 5, kind: input, shape index: {}]   ;;  %s631_s6 = inlined_call_operand.vmem [shape: bf16[6,32], index: 6, kind: input, shape index: {}]   ;;  %s632_s7 = inlined_call_operand.vmem [shape: f32[6,1], index: 7, kind: input, shape index: {}]   ;;  %s633_s8 = inlined_call_operand.hbm [shape: s32[1,128], index: 8, kind: output, shape index: {0}]   ;;  %s634_s9 = inlined_call_operand.hbm [shape: f32[2,128], index: 9, kind: output, shape index: {1}]  }
   0x1   :  { %v436_v0 = vld [vmem:[%s625_s0] sm:$0xff]   ;;  %v438_v2 = vld [vmem:[%s627_s2 + $0x8] sm:$0xff]   ;;  %434 = vset.pattern.permute.xlu0 %v507_v3  ;;  %v42_v4 = vld [vmem:[%s628_s3 + $0x10] sm:$0xff]  ;;  %435 = vset.pattern.permute.xlu1 %v507_v3 }
   0x2   :  { %v437_v1 = vld [vmem:[%s627_s2] sm:$0xff]   ;;  %407 = vmatprep.subr.bf16.mxu0 %v436_v0  ;;  %56 = vperm.xlu0 %434, %v42_v4   ;;  %v43_v6 = vld [vmem:[%s628_s3 + $0x18] sm:$0xff]  ;;  %v41_v7 = vld [vmem:[%s628_s3 + $0x8] sm:$0xff] }
   0x3   :  { %408 = vmatpush3.bf16.msra.mxu0 %v436_v0  ;;  %409 = vmatprep.mubr.msk.bf16.mxu0 %vm80_vm0, %v437_v1  ;;  %v40_v5 = vld [vmem:[%s628_s3] sm:$0xff] }
   0x4   :  { %46 = vperm.xlu1 %435, %v40_v5  }
   0x6   :  { %410 = vmatmul.mubr.msk.bf16.vlgmr.msra.gmra.mxu0 %vm80_vm0, %v438_v2 }
   0x7   :  { %16 = vsyncpa [#allocation5], 0  ;;  %61 = vperm.xlu0 %434, %v43_v6   ;;  %v148_v8 = vld [vmem:[%s630_s5 + $0x10] sm:$0xff]  ;;  %v149_v9 = vld [vmem:[%s630_s5 + $0x18] sm:$0xff]  ;;  %vm180_vm1 = vcmask 261120   ;;  %v508_v33 = vmov 0.0   ;;  %v324_v6 = vlaneseq }
   0x8   :  { %51 = vperm.xlu1 %435, %v41_v7   ;;  %v146_v10 = vld [vmem:[%s630_s5] sm:$0xff]  ;;  %v147_v11 = vld [vmem:[%s630_s5 + $0x8] sm:$0xff]  ;;  %421 = vmatprep.subr.bf16.mxu0 %v508_v33  ;;  %vm509_vm2 = vmmov 0   ;;  %vm292_vm3 = vcmask 1045504  }
   0x9   :  { %v243_v12 = vld [vmem:[%s632_s7] sm:$0x3f]  ;;  %v440_v32 = vld [vmem:[%s629_s4 + $0x8] sm:$0xff]   ;;  %425 = vmatprep.mubr.msk.bf16.mxu0 %vm509_vm2, %v508_v33 }
   0xa   :  { %v439_v13 = vld [vmem:[%s629_s4] sm:$0xff]  }
   0xb   :  { %162 = vperm.xlu0 %434, %v148_v8   ;;  %417 = vmatprep.mubr.msk.bf16.mxu1 %vm180_vm1, %v439_v13  ;;  %v242_v52 = vld [vmem:[%s631_s6] sm:$0x7] }
   0xc   :  { %167 = vperm.xlu1 %435, %v149_v9   ;;  %v326_v55 = vld [vmem:[%s626_s1] sm:$0x3f]  ;;  %s510_s1 = smov [#allocation2]  }
   0xd   :  { %s365_s6 = sshll.u32 %s510_s1, 4  ;;  %s366_s6 = int_to_ptr.vmem [resolvable:$true] %s365_s6 }
   0xe   :  { %s463_s14 = scalar_lea.vmem %s366_s6, 16  ;;  %s467_s15 = scalar_lea.vmem %s366_s6, 32 }
   0xf   :  { %152 = vperm.xlu0 %434, %v146_v10   ;;  %p464_p0 = scmp.ne.s32.totalorder %s366_s6, %s463_s14  ;;  %p468_p1 = scmp.lt.s32.totalorder %s366_s6, %s366_s6 }
  0x10   :  { %157 = vperm.xlu1 %435, %v147_v11   ;;  %v325_v11 = vshrl.u32 %v324_v6, 7  ;;  %p469_p2 = scmp.lt.s32.totalorder %s467_s15, %s463_s14 }
  0x12   :  { %p470_p3 = por %p469_p2, %p468_p1 }
  0x13   :  { %246 = vperm.xlu0 %434, %v243_v12  }
  0x14   :  { %p471_p4 = pnand %p470_p3, %p464_p0 }
  0x7d   :  { %v57_v14 = vpop.permute.xlu0 %56 }
  0x7f   :  { %v47_v15 = vpop.permute.xlu1 %46 }
  0x82   :  { %v62_v19 = vpop.permute.xlu0 %61 }
  0x83   :  { %v52_v23 = vpop.permute.xlu1 %51 }
  0x86   :  { %v163_v34 = vpop.permute.xlu0 %162 }
  0x87   :  { %v168_v35 = vpop.permute.xlu1 %167 }
  0x8a   :  { %v153_v40 = vpop.permute.xlu0 %152 }
  0x8b   :  { %v158_v42 = vpop.permute.xlu1 %157 }
  0x8e   :  { %v247_v53 = vpop.permute.xlu0 %246 }
  0xc6   :  { %v411_v16 = vpop.f32.mrf.mxu0 }
  0xc7   :  { %v130_v17 = vadd.f32 %v411_v16, %v57_v14 }
  0xc8   :  { %v121_v18 = vpop.f32.mrf.mxu0 }
  0xc9   :  { %v122_v20 = vadd.f32 %v121_v18, %v47_v15  ;;  %441 = vtanh.f32 %v130_v17 }
  0xca   :  { %v412_v21 = vpop.f32.mrf.mxu0 }
  0xcb   :  { %v133_v22 = vadd.f32 %v412_v21, %v62_v19 }
  0xcc   :  { %v124_v24 = vpop.f32.mrf.mxu0 }
  0xcd   :  { %443 = vtanh.f32 %v133_v22  ;;  %v125_v25 = vadd.f32 %v124_v24, %v52_v23 }
  0xce   :  { %445 = vtanh.f32 %v122_v20 }
  0xcf   :  { %447 = vtanh.f32 %v125_v25 }
  0xd6   :  { %v442_v26 = vpop.eup %441 }
  0xda   :  { %v444_v27 = vpop.eup %443 }
  0xdb   :  { %v446_v28 = vpop.eup %445  ;;  %v141_v29 = vpack.c.bf16 %v444_v27, %v442_v26 }
  0xdc   :  { %v448_v30 = vpop.eup %447 }
  0xdd   :  { %413 = vmatprep.subr.bf16.mxu1 %v141_v29  ;;  %v140_v31 = vpack.c.bf16 %v448_v30, %v446_v28 }
  0xde   :  { %414 = vmatpush3.bf16.msra.mxu1 %v141_v29 }
  0xdf   :  { %415 = vmatprep.subr.bf16.mxu1 %v140_v31 }
  0xe2   :  { %416 = vmatpush3.bf16.msra.mxu1 %v140_v31 }
  0xe5   :  { %418 = vmatmul.mubr.msk.bf16.vlgmr.msra.gmra.mxu1 %vm180_vm1, %v440_v32 }
 0x1a5   :  { %v419_v36 = vpop.f32.mrf.mxu1 }
 0x1a6   :  { %v230_v37 = vadd.f32 %v419_v36, %v163_v34 }
 0x1a7   :  { %v221_v38 = vpop.f32.mrf.mxu1 }
 0x1a8   :  { %449 = vtanh.f32 %v230_v37  ;;  %v222_v44 = vadd.f32 %v221_v38, %v153_v40 }
 0x1a9   :  { %v420_v39 = vpop.f32.mrf.mxu1 }
 0x1aa   :  { %v233_v41 = vadd.f32 %v420_v39, %v168_v35 }
 0x1ab   :  { %v224_v43 = vpop.f32.mrf.mxu1 }
 0x1ac   :  { %451 = vtanh.f32 %v233_v41  ;;  %v225_v45 = vadd.f32 %v224_v43, %v158_v42 }
 0x1ae   :  { %453 = vtanh.f32 %v225_v45 }
 0x1af   :  { %455 = vtanh.f32 %v222_v44 }
 0x1b5   :  { %v450_v46 = vpop.eup %449 }
 0x1b9   :  { %v452_v47 = vpop.eup %451 }
 0x1ba   :  { %v241_v48 = vpack.c.bf16 %v452_v47, %v450_v46 }
 0x1bb   :  { %v454_v49 = vpop.eup %453 }
 0x1bc   :  { %422 = vmatpush3.bf16.msra.mxu0 %v241_v48  ;;  %v456_v50 = vpop.eup %455 }
 0x1bd   :  { %423 = vmatprep.subr.bf16.mxu0 %v508_v33  ;;  %v240_v51 = vpack.c.bf16 %v454_v49, %v456_v50 }
 0x1c0   :  { %424 = vmatpush3.bf16.msra.mxu0 %v240_v51 }
 0x1c3   :  { %426 = vmatmul.mubr.msk.bf16.vlgmr.msra.gmra.mxu0 %vm180_vm1, %v242_v52 }
 0x283   :  { %v286_v54 = vpop.f32.mrf.mxu0 }
 0x284   :  { %v287_v56 = vadd.f32 %v286_v54, %v247_v53 }
 0x285   :  { %v427_v57 = vpop.f32.mrf.mxu0 }
 0x286   :  { %v293_v58 = vsel %vm292_vm3, %v287_v56, -inf  ;;  %v327_v59 = vadd.f32 %v326_v55, %v287_v56 }
 0x287   :  { %v294_v60 = vrot.slane %v293_v58, 4  ;;  %v289_v61 = vpop.f32.mrf.mxu0 }
 0x288   :  { %v328_v62 = vsel %vm292_vm3, %v327_v59, -inf }
 0x289   :  { %v295_v63 = vmax.f32 %v293_v58, %v294_v60  ;;  %v329_v0 = vrot.slane %v328_v62, 4  ;;  %v428_v1 = vpop.f32.mrf.mxu0 }
 0x28b   :  { %v296_v2 = vrot.slane %v295_v63, 2  ;;  %v330_v3 = vmax.f32 %v328_v62, %v329_v0 }
 0x28d   :  { %v297_v4 = vmax.f32 %v295_v63, %v296_v2  ;;  %v331_v5 = vrot.slane %v330_v3, 2 }
 0x28f   :  { %v298_v7 = vrot.slane %v297_v4, 1  ;;  %v332_v8 = vmax.f32 %v330_v3, %v331_v5 }
 0x291   :  { %v299_v9 = vmax.f32 %v297_v4, %v298_v7  ;;  %v333_v10 = vrot.slane %v332_v8, 1 }
 0x293   :  { %v300_v12 = vsub.f32 %v287_v56, %v299_v9  ;;  %v334_v13 = vmax.f32 %v332_v8, %v333_v10 }
 0x295   :  { %v301_v14 = vmul.f32 1.442695, %v300_v12  ;;  %vm335_vm4 = vcmp.ge.f32.partialorder %v327_v59, %v334_v13 }
 0x296   :  { %v336_v15 = vsel %vm335_vm4, %v325_v11, 6 }
 0x297   :  { %457 = vpow2.f32 %v301_v14  ;;  %v337_v16 = vsel %vm292_vm3, %v336_v15, 2147483647 }
 0x298   :  { %v338_v17 = vrot.slane %v337_v16, 4 }
 0x29a   :  { %vm339_vm5 = vcmp.lt.s32.totalorder %v337_v16, %v338_v17 }
 0x29b   :  { %v340_v18 = vsel %vm339_vm5, %v337_v16, %v338_v17 }
 0x29c   :  { %v341_v19 = vrot.slane %v340_v18, 2 }
 0x29e   :  { %vm342_vm6 = vcmp.lt.s32.totalorder %v340_v18, %v341_v19 }
 0x29f   :  { %v343_v20 = vsel %vm342_vm6, %v340_v18, %v341_v19 }
 0x2a0   :  { %v344_v21 = vrot.slane %v343_v20, 1 }
 0x2a2   :  { %vm345_vm7 = vcmp.lt.s32.totalorder %v343_v20, %v344_v21 }
 0x2a3   :  { %v346_v22 = vsel %vm345_vm7, %v343_v20, %v344_v21 }
 0x2a4   :  { %v458_v23 = vpop.eup %457  ;;  %356 = vst [vmem:[#allocation2] sm:$0x1] %v346_v22 }
 0x2a5   :  { %v313_v24 = vmul.f32 %v458_v23, %v300_v12  ;;  %v303_v25 = vsel %vm292_vm3, %v458_v23, 0.0 }
 0x2a6   :  { %474 = shalt.err (!%p471_p4)
}
 0x2a7   :  { %368 = dma.vmem_to_hbm [thread:$0]  %s366_s6, 16, %s633_s8, [#allocation3]   ;;  %v304_v26 = vrot.slane %v303_v25, 4  ;;  %v314_v27 = vsel %vm292_vm3, %v313_v24, 0.0  ;;  %vm347_vm8 = vcmp.eq.s32.totalorder %v325_v11, %v346_v22 }
 0x2a8   :  { %v315_v30 = vrot.slane %v314_v27, 4  ;;  %s511_s8 = smov [#allocation4]  }
 0x2a9   :  { %v305_v28 = vadd.f32 %v304_v26, %v303_v25  ;;  %s375_s17 = sshll.u32 %s511_s8, 4  ;;  %s376_s17 = int_to_ptr.vmem [resolvable:$true] %s375_s17 }
 0x2aa   :  { %v316_v33 = vadd.f32 %v315_v30, %v314_v27  ;;  %s483_s18 = scalar_lea.vmem %s376_s17, 32  ;;  %p488_p6 = scmp.lt.s32.totalorder %s376_s17, %s376_s17 }
 0x2ab   :  { %v306_v29 = vrot.slane %v305_v28, 2  ;;  %p484_p5 = scmp.ne.s32.totalorder %s376_s17, %s483_s18  ;;  %p489_p7 = scmp.lt.s32.totalorder %s483_s18, %s483_s18 }
 0x2ac   :  { %v317_v35 = vrot.slane %v316_v33, 2 }
 0x2ad   :  { %v307_v31 = vadd.f32 %v306_v29, %v305_v28  ;;  %p490_p8 = por %p489_p7, %p488_p6 }
 0x2ae   :  { %v318_v36 = vadd.f32 %v317_v35, %v316_v33 }
 0x2af   :  { %v308_v32 = vrot.slane %v307_v31, 1  ;;  %p491_p9 = pnand %p490_p8, %p484_p5 }
 0x2b0   :  { %v319_v37 = vrot.slane %v318_v36, 1 }
 0x2b1   :  { %v309_v34 = vadd.f32 %v308_v32, %v307_v31 }
 0x2b2   :  { %v320_v39 = vadd.f32 %v319_v37, %v318_v36 }
 0x2b3   :  { %459 = vlog2.f32 %v309_v34 }
 0x2b4   :  { %461 = vrcp.f32 %v309_v34 }
 0x2c0   :  { %v460_v38 = vpop.eup %459 }
 0x2c1   :  { %v462_v40 = vpop.eup %461  ;;  %v311_v41 = vmul.f32 0.6931472, %v460_v38 }
 0x2c2   :  { %v322_v42 = vmul.f32 %v462_v40, %v320_v39 }
 0x2c3   :  { %v312_v43 = vsub.f32 %v300_v12, %v311_v41 }
 0x2c4   :  { %v323_v44 = vsub.f32 %v311_v41, %v322_v42 }
 0x2c5   :  { %v348_v45 = vsel %vm347_vm8, %v312_v43, 0.0 }
 0x2c6   :  { %v349_v46 = vsel %vm292_vm3, %v348_v45, 0.0  ;;  %358 = vst [vmem:[#allocation4 + $0x1] sm:$0x1] %v323_v44 }
 0x2c7   :  { %v350_v47 = vrot.slane %v349_v46, 4 }
 0x2c9   :  { %v351_v48 = vadd.f32 %v350_v47, %v349_v46 }
 0x2cb   :  { %v352_v49 = vrot.slane %v351_v48, 2 }
 0x2cd   :  { %v353_v50 = vadd.f32 %v352_v49, %v351_v48 }
 0x2cf   :  { %v354_v51 = vrot.slane %v353_v50, 1 }
 0x2d1   :  { %v355_v52 = vadd.f32 %v354_v51, %v353_v50 }
 0x2d3   :  { %357 = vst [vmem:[#allocation4] sm:$0x1] %v355_v52 }
 0x2d4   :  { %494 = shalt.err (!%p491_p9)
}
 0x2d5   :  { %378 = dma.vmem_to_hbm [thread:$0]  %s376_s17, 32, %s634_s9, [#allocation5]  }
 0x2d6   :  { %503 = dma.done.wait [#allocation3], 16  }
 0x2d7   :  { %504 = vsyncadd [#allocation3], 4294967280 }
 0x2d8   :  { %505 = dma.done.wait [#allocation5], 32  }
 0x2d9   :  { %506 = vsyncadd [#allocation5], 4294967264 }
 0x2da   :  { %385 = vsyncpa [#allocation3], 1 }
 0x2db   :  { %386 = vsyncpa [#allocation5], 1 }

</bundles_post_ra>
